<compile_context>
chip_gen: v7x
topology: tpu7x:2x2x1
jax: 0.10.0
libtpu: 0.0.40
codegen_flags: <defaults>
</compile_context>

<pallas_src>
import functools

import jax
import jax.numpy as jnp
from jax.experimental import pallas as pl
from jax.experimental.pallas import tpu as pltpu


# ----------------------------------------------------------------------------
# Pallas kernels: tiled matmul + bias [+ residual] [+ ReLU], f32 accumulator
# ----------------------------------------------------------------------------
def _matmul_bias_kernel(p_ref, w_ref, b_ref, o_ref, acc_ref, *, apply_relu):
    k = pl.program_id(2)

    @pl.when(k == 0)
    def _init():
        acc_ref[...] = jnp.zeros_like(acc_ref)

    acc_ref[...] += jnp.dot(p_ref[...], w_ref[...],
                            preferred_element_type=jnp.float32)

    @pl.when(k == pl.num_programs(2) - 1)
    def _finalize():
        y = acc_ref[...] + b_ref[...]
        if apply_relu:
            y = jnp.maximum(y, 0.0)
        o_ref[...] = y.astype(o_ref.dtype)


def _matmul_bias_res_relu_kernel(p_ref, w_ref, b_ref, r_ref, o_ref, acc_ref):
    k = pl.program_id(2)

    @pl.when(k == 0)
    def _init():
        acc_ref[...] = jnp.zeros_like(acc_ref)

    acc_ref[...] += jnp.dot(p_ref[...], w_ref[...],
                            preferred_element_type=jnp.float32)

    @pl.when(k == pl.num_programs(2) - 1)
    def _finalize():
        y = acc_ref[...] + b_ref[...] + r_ref[...].astype(jnp.float32)
        o_ref[...] = jnp.maximum(y, 0.0).astype(o_ref.dtype)


def _round_up(x, m):
    return (x + m - 1) // m * m


def matmul_bn_pallas(patches, w_mat, bias, *, residual=None, apply_relu=True,
                     out_dtype=jnp.float32):
    """(M, K) @ (K, Cout) + bias [+ residual] [ReLU] -> (M, Cout).

    BN scale is expected to already be folded into w_mat.  Inputs are cast to
    bf16 for the MXU; accumulation is f32.
    """
    M, K = patches.shape
    Kw, Cout = w_mat.shape
    assert Kw == K

    # --- tile sizes: lane-dense output (tn=128), VMEM-friendly on v5e/v6e/v7x
    tn = 128
    Np = _round_up(Cout, tn)
    if M <= 256:
        tm = _round_up(M, 8)
        Mp = tm
    else:
        tm = 256
        Mp = _round_up(M, tm)
    if K <= 512:
        tk, Kp = K, K          # single K step; block last dim == full dim
    else:
        tk = 512
        Kp = _round_up(K, tk)

    # --- zero-pad operands (zero padding contributes exact zeros to the dot)
    p = jnp.pad(patches.astype(jnp.bfloat16), ((0, Mp - M), (0, Kp - K)))
    w = jnp.pad(w_mat.astype(jnp.bfloat16), ((0, Kp - K), (0, Np - Cout)))
    b = jnp.pad(bias.astype(jnp.float32), ((0, Np - Cout),)).reshape(1, Np)

    grid = (Mp // tm, Np // tn, Kp // tk)

    in_specs = [
        pl.BlockSpec((tm, tk), lambda i, j, k: (i, k)),
        pl.BlockSpec((tk, tn), lambda i, j, k: (k, j)),
        pl.BlockSpec((1, tn), lambda i, j, k: (0, j)),
    ]
    args = [p, w, b]
    if residual is not None:
        r = jnp.pad(residual.astype(jnp.bfloat16),
                    ((0, Mp - M), (0, Np - Cout)))
        in_specs.append(pl.BlockSpec((tm, tn), lambda i, j, k: (i, j)))
        args.append(r)
        kernel = _matmul_bias_res_relu_kernel
    else:
        kernel = functools.partial(_matmul_bias_kernel, apply_relu=apply_relu)

    out_dtype = jnp.dtype(out_dtype)
    flops = 2 * Mp * Kp * Np
    bytes_accessed = (Mp * Kp * 2 + Kp * Np * 2 + Np * 4
                      + Mp * Np * out_dtype.itemsize
                      + (Mp * Np * 2 if residual is not None else 0))

    out = pl.pallas_call(
        kernel,
        out_shape=jax.ShapeDtypeStruct((Mp, Np), out_dtype),
        grid_spec=pltpu.PrefetchScalarGridSpec(
            num_scalar_prefetch=0,
            grid=grid,
            in_specs=in_specs,
            out_specs=pl.BlockSpec((tm, tn), lambda i, j, k: (i, j)),
            scratch_shapes=[pltpu.VMEM((tm, tn), jnp.float32)],
        ),
        compiler_params=pltpu.CompilerParams(
            dimension_semantics=("parallel", "parallel", "arbitrary"),
            vmem_limit_bytes=32 * 1024 * 1024,
        ),
        cost_estimate=pl.CostEstimate(
            flops=flops, transcendentals=0, bytes_accessed=bytes_accessed),
    )(*args)

    return out[:M, :Cout]


# ----------------------------------------------------------------------------
# Glue: im2col patch extraction (bf16), BN folding
# ----------------------------------------------------------------------------
def im2col_3x3(x_nhwc, stride):
    """3x3, padding=1 patch extraction.  Returns ((M, 9*C), (N, Ho, Wo))."""
    N, H, W, C = x_nhwc.shape
    xp = jnp.pad(x_nhwc, ((0, 0), (1, 1), (1, 1), (0, 0)))
    Ho = (H - 1) // stride + 1
    Wo = (W - 1) // stride + 1
    taps = []
    for ky in range(3):
        for kx in range(3):
            sl = xp[:, ky:ky + (Ho - 1) * stride + 1:stride,
                       kx:kx + (Wo - 1) * stride + 1:stride, :]
            taps.append(sl)
    patches = jnp.concatenate(taps, axis=-1)          # (N, Ho, Wo, 9*C)
    return patches.reshape(N * Ho * Wo, 9 * C), (N, Ho, Wo)


def fold_bn(gamma, beta, mean, var, eps=1e-5):
    scale = gamma / jnp.sqrt(var + eps)
    bias = beta - mean * scale
    return scale, bias


# ----------------------------------------------------------------------------
# BasicBlock forward (eval mode: dropout == identity, BN uses running stats)
# ----------------------------------------------------------------------------
def basic_block_forward(x_nchw, params, *, stride):
    x = jnp.transpose(x_nchw, (0, 2, 3, 1))           # NCHW -> NHWC
    N, H, W, Cin = x.shape
    planes = params["w1"].shape[-1]
    x_bf = x.astype(jnp.bfloat16)

    # conv1 (3x3, stride) + bn1 + relu   (dropout == identity in eval)
    s1, b1 = fold_bn(*params["bn1"])
    w1_mat = params["w1"].reshape(9 * Cin, planes) * s1[None, :]   # fold scale
    p1, (N, Ho, Wo) = im2col_3x3(x_bf, stride)
    out1 = matmul_bn_pallas(p1, w1_mat, b1, apply_relu=True,
                            out_dtype=jnp.bfloat16)
    out1_nhwc = out1.reshape(N, Ho, Wo, planes)

    # shortcut path (1x1 conv + bn when shape changes, else identity)
    if stride != 1 or Cin != planes:
        ssc, bsc = fold_bn(*params["bnsc"])
        wsc_mat = params["wsc"].reshape(Cin, planes) * ssc[None, :]
        sc_in = x_bf[:, ::stride, ::stride, :].reshape(N * Ho * Wo, Cin)
        res = matmul_bn_pallas(sc_in, wsc_mat, bsc, apply_relu=False,
                               out_dtype=jnp.bfloat16)
    else:
        res = x_bf.reshape(N * Ho * Wo, planes)

    # conv2 (3x3, stride 1) + bn2 + residual add + relu (fused epilogue)
    s2, b2 = fold_bn(*params["bn2"])
    w2_mat = params["w2"].reshape(9 * planes, planes) * s2[None, :]
    p2, _ = im2col_3x3(out1_nhwc, 1)
    out2 = matmul_bn_pallas(p2, w2_mat, b2, residual=res, apply_relu=True,
                            out_dtype=jnp.float32)

    out = out2.reshape(N, Ho, Wo, planes)
    return jnp.transpose(out, (0, 3, 1, 2))           # NHWC -> NCHW


# ----------------------------------------------------------------------------
# Pure-JAX reference (same math, lax.conv, f32) for a correctness check
# ----------------------------------------------------------------------------
def reference_forward(x_nchw, params, stride):
    x = jnp.transpose(x_nchw, (0, 2, 3, 1))
    dn = ("NHWC", "HWIO", "NHWC")
    prec = jax.lax.Precision.HIGHEST

    def conv(inp, w, s):
        return jax.lax.conv_general_dilated(
            inp, w, window_strides=(s, s), padding=((1, 1), (1, 1)),
            dimension_numbers=dn, precision=prec)

    s1, b1 = fold_bn(*params["bn1"])
    o = jnp.maximum(conv(x, params["w1"], stride) * s1 + b1, 0.0)
    s2, b2 = fold_bn(*params["bn2"])
    o = conv(o, params["w2"], 1) * s2 + b2

    Cin = x.shape[-1]
    planes = params["w1"].shape[-1]
    if stride != 1 or Cin != planes:
        ssc, bsc = fold_bn(*params["bnsc"])
        sc = jax.lax.conv_general_dilated(
            x, params["wsc"], window_strides=(stride, stride),
            padding=((0, 0), (0, 0)), dimension_numbers=dn, precision=prec)
        sc = sc * ssc + bsc
    else:
        sc = x
    o = jnp.maximum(o + sc, 0.0)
    return jnp.transpose(o, (0, 3, 1, 2))


# ----------------------------------------------------------------------------
def make_params(key, in_planes, planes):
    ks = jax.random.split(key, 16)

    def bn(k):
        k1, k2, k3, k4 = jax.random.split(k, 4)
        gamma = 1.0 + 0.1 * jax.random.normal(k1, (planes,), jnp.float32)
        beta = 0.1 * jax.random.normal(k2, (planes,), jnp.float32)
        mean = 0.1 * jax.random.normal(k3, (planes,), jnp.float32)
        var = 0.5 + jnp.abs(jax.random.normal(k4, (planes,), jnp.float32)) * 0.5
        return (gamma, beta, mean, var)

    return {
        "w1": 0.1 * jax.random.normal(ks[0], (3, 3, in_planes, planes), jnp.float32),
        "w2": 0.1 * jax.random.normal(ks[1], (3, 3, planes, planes), jnp.float32),
        "wsc": 0.1 * jax.random.normal(ks[2], (1, 1, in_planes, planes), jnp.float32),
        "bn1": bn(ks[3]),
        "bn2": bn(ks[4]),
        "bnsc": bn(ks[5]),
    }


if __name__ == "__main__":
    key = jax.random.PRNGKey(0)
    kx, kp = jax.random.split(key)

    in_planes, planes, stride = 4, 8, 2
    x = jax.random.normal(kx, (2, in_planes, 16, 16), jnp.float32)  # NCHW
    params = make_params(kp, in_planes, planes)

    fwd = jax.jit(basic_block_forward, static_argnames=("stride",))
    out = jax.block_until_ready(fwd(x, params, stride=stride))

    ref = reference_forward(x, params, stride)
    assert out.shape == ref.shape == (2, planes, 8, 8), out.shape
    max_err = float(jnp.max(jnp.abs(out - ref)))
    # bf16 MXU inputs / bf16 intermediates -> tolerance relaxed vs. f32 HIGHEST.
    assert max_err < 5e-2, max_err

    print("KERNEL_OK")
</pallas_src>

<mosaic_0001>
module attributes {stable_mosaic.version = 11 : i64} {
  func.func @_matmul_bias_kernel(%arg0: i32, %arg1: i32, %arg2: i32, %arg3: memref<128x36xbf16, #tpu.memory_space<vmem>>, %arg4: memref<36x128xbf16, #tpu.memory_space<vmem>>, %arg5: memref<1x128xf32, #tpu.memory_space<vmem>>, %arg6: memref<128x128xbf16, #tpu.memory_space<vmem>>, %arg7: memref<128x128xf32, #tpu.memory_space<vmem>>) attributes {dimension_semantics = [#tpu.dimension_semantics<parallel>, #tpu.dimension_semantics<parallel>, #tpu.dimension_semantics<arbitrary>], iteration_bounds = array<i64: 1, 1, 1>, scalar_prefetch = 0 : i64, scratch_operands = 1 : i64, tpu.core_type = #tpu.core_type<tc>, window_params = [{transform_indices = @transform_0, window_bounds = array<i64: 128, 36>}, {transform_indices = @transform_1, window_bounds = array<i64: 36, 128>}, {transform_indices = @transform_2, window_bounds = array<i64: 1, 128>}, {transform_indices = @transform_3, window_bounds = array<i64: 128, 128>}]} {
    %c0_i32 = arith.constant 0 : i32
    %0 = arith.cmpi eq, %arg2, %c0_i32 : i32
    %1 = arith.extui %0 : i1 to i32
    %c0_i32_0 = arith.constant 0 : i32
    %2 = arith.cmpi ne, %1, %c0_i32_0 : i32
    scf.if %2 {
      %cst_10 = arith.constant 0.000000e+00 : f32
      %12 = vector.broadcast %cst_10 : f32 to vector<128x128xf32>
      %c0_11 = arith.constant 0 : index
      %c0_12 = arith.constant 0 : index
      %13 = vector.load %arg7[%c0_11, %c0_12] : memref<128x128xf32, #tpu.memory_space<vmem>>, vector<128x128xf32>
      tpu.vector_store %arg7[%c0_11, %c0_12], %12 {strides = array<i32>} : memref<128x128xf32, #tpu.memory_space<vmem>>, vector<128x128xf32>,
    } else {
    }
    %c0 = arith.constant 0 : index
    %c0_1 = arith.constant 0 : index
    %3 = vector.load %arg7[%c0, %c0_1] : memref<128x128xf32, #tpu.memory_space<vmem>>, vector<128x128xf32>
    %c0_2 = arith.constant 0 : index
    %c0_3 = arith.constant 0 : index
    %4 = vector.load %arg3[%c0_2, %c0_3] : memref<128x36xbf16, #tpu.memory_space<vmem>>, vector<128x36xbf16>
    %c0_4 = arith.constant 0 : index
    %c0_5 = arith.constant 0 : index
    %5 = vector.load %arg4[%c0_4, %c0_5] : memref<36x128xbf16, #tpu.memory_space<vmem>>, vector<36x128xbf16>
    %cst = arith.constant dense<0.000000e+00> : vector<128x128xf32>
    %6 = tpu.matmul %4, %5, %cst {dimension_numbers = #tpu.dot_dimension_numbers<[1], [0], [0], [1], [0, 0, 1, 1], [], []>} : vector<128x36xbf16>, vector<36x128xbf16>, vector<128x128xf32> -> vector<128x128xf32>
    %7 = arith.addf %3, %6 : vector<128x128xf32>
    %c0_6 = arith.constant 0 : index
    %c0_7 = arith.constant 0 : index
    %8 = vector.load %arg7[%c0_6, %c0_7] : memref<128x128xf32, #tpu.memory_space<vmem>>, vector<128x128xf32>
    tpu.vector_store %arg7[%c0_6, %c0_7], %7 {strides = array<i32>} : memref<128x128xf32, #tpu.memory_space<vmem>>, vector<128x128xf32>,
    %c0_i32_8 = arith.constant 0 : i32
    %9 = arith.cmpi eq, %arg2, %c0_i32_8 : i32
    %10 = arith.extui %9 : i1 to i32
    %c0_i32_9 = arith.constant 0 : i32
    %11 = arith.cmpi ne, %10, %c0_i32_9 : i32
    scf.if %11 {
      %c0_10 = arith.constant 0 : index
      %c0_11 = arith.constant 0 : index
      %12 = vector.load %arg7[%c0_10, %c0_11] : memref<128x128xf32, #tpu.memory_space<vmem>>, vector<128x128xf32>
      %c0_12 = arith.constant 0 : index
      %c0_13 = arith.constant 0 : index
      %13 = vector.load %arg5[%c0_12, %c0_13] : memref<1x128xf32, #tpu.memory_space<vmem>>, vector<1x128xf32>
      %14 = vector.broadcast %13 : vector<1x128xf32> to vector<128x128xf32>
      %15 = arith.addf %12, %14 : vector<128x128xf32>
      %cst_14 = arith.constant 0.000000e+00 : f32
      %16 = vector.broadcast %cst_14 : f32 to vector<128x128xf32>
      %17 = arith.maximumf %15, %16 : vector<128x128xf32>
      %18 = arith.truncf %17 : vector<128x128xf32> to vector<128x128xbf16>
      %c0_15 = arith.constant 0 : index
      %c0_16 = arith.constant 0 : index
      %19 = vector.load %arg6[%c0_15, %c0_16] : memref<128x128xbf16, #tpu.memory_space<vmem>>, vector<128x128xbf16>
      tpu.vector_store %arg6[%c0_15, %c0_16], %18 {strides = array<i32>} : memref<128x128xbf16, #tpu.memory_space<vmem>>, vector<128x128xbf16>,
    } else {
    }
    return
  }
  func.func @transform_0(%arg0: i32, %arg1: i32, %arg2: i32) -> (i32, i32) {
    %c0_i32 = arith.constant 0 : i32
    return %arg0, %arg2 : i32, i32
  }
  func.func @transform_1(%arg0: i32, %arg1: i32, %arg2: i32) -> (i32, i32) {
    %c0_i32 = arith.constant 0 : i32
    return %arg2, %arg1 : i32, i32
  }
  func.func @transform_2(%arg0: i32, %arg1: i32, %arg2: i32) -> (i32, i32) {
    %c0_i32 = arith.constant 0 : i32
    %c0_i32_0 = arith.constant 0 : i32
    return %c0_i32, %arg1 : i32, i32
  }
  func.func @transform_3(%arg0: i32, %arg1: i32, %arg2: i32) -> (i32, i32) {
    %c0_i32 = arith.constant 0 : i32
    return %arg0, %arg1 : i32, i32
  }
}

module attributes {stable_mosaic.version = 11 : i64} {
  func.func @_matmul_bias_kernel(%arg0: i32, %arg1: i32, %arg2: i32, %arg3: memref<128x4xbf16, #tpu.memory_space<vmem>>, %arg4: memref<4x128xbf16, #tpu.memory_space<vmem>>, %arg5: memref<1x128xf32, #tpu.memory_space<vmem>>, %arg6: memref<128x128xbf16, #tpu.memory_space<vmem>>, %arg7: memref<128x128xf32, #tpu.memory_space<vmem>>) attributes {dimension_semantics = [#tpu.dimension_semantics<parallel>, #tpu.dimension_semantics<parallel>, #tpu.dimension_semantics<arbitrary>], iteration_bounds = array<i64: 1, 1, 1>, scalar_prefetch = 0 : i64, scratch_operands = 1 : i64, tpu.core_type = #tpu.core_type<tc>, window_params = [{transform_indices = @transform_0, window_bounds = array<i64: 128, 4>}, {transform_indices = @transform_1, window_bounds = array<i64: 4, 128>}, {transform_indices = @transform_2, window_bounds = array<i64: 1, 128>}, {transform_indices = @transform_3, window_bounds = array<i64: 128, 128>}]} {
    %c0_i32 = arith.constant 0 : i32
    %0 = arith.cmpi eq, %arg2, %c0_i32 : i32
    %1 = arith.extui %0 : i1 to i32
    %c0_i32_0 = arith.constant 0 : i32
    %2 = arith.cmpi ne, %1, %c0_i32_0 : i32
    scf.if %2 {
      %cst_10 = arith.constant 0.000000e+00 : f32
      %12 = vector.broadcast %cst_10 : f32 to vector<128x128xf32>
      %c0_11 = arith.constant 0 : index
      %c0_12 = arith.constant 0 : index
      %13 = vector.load %arg7[%c0_11, %c0_12] : memref<128x128xf32, #tpu.memory_space<vmem>>, vector<128x128xf32>
      tpu.vector_store %arg7[%c0_11, %c0_12], %12 {strides = array<i32>} : memref<128x128xf32, #tpu.memory_space<vmem>>, vector<128x128xf32>,
    } else {
    }
    %c0 = arith.constant 0 : index
    %c0_1 = arith.constant 0 : index
    %3 = vector.load %arg7[%c0, %c0_1] : memref<128x128xf32, #tpu.memory_space<vmem>>, vector<128x128xf32>
    %c0_2 = arith.constant 0 : index
    %c0_3 = arith.constant 0 : index
    %4 = vector.load %arg3[%c0_2, %c0_3] : memref<128x4xbf16, #tpu.memory_space<vmem>>, vector<128x4xbf16>
    %c0_4 = arith.constant 0 : index
    %c0_5 = arith.constant 0 : index
    %5 = vector.load %arg4[%c0_4, %c0_5] : memref<4x128xbf16, #tpu.memory_space<vmem>>, vector<4x128xbf16>
    %cst = arith.constant dense<0.000000e+00> : vector<128x128xf32>
    %6 = tpu.matmul %4, %5, %cst {dimension_numbers = #tpu.dot_dimension_numbers<[1], [0], [0], [1], [0, 0, 1, 1], [], []>} : vector<128x4xbf16>, vector<4x128xbf16>, vector<128x128xf32> -> vector<128x128xf32>
    %7 = arith.addf %3, %6 : vector<128x128xf32>
    %c0_6 = arith.constant 0 : index
    %c0_7 = arith.constant 0 : index
    %8 = vector.load %arg7[%c0_6, %c0_7] : memref<128x128xf32, #tpu.memory_space<vmem>>, vector<128x128xf32>
    tpu.vector_store %arg7[%c0_6, %c0_7], %7 {strides = array<i32>} : memref<128x128xf32, #tpu.memory_space<vmem>>, vector<128x128xf32>,
    %c0_i32_8 = arith.constant 0 : i32
    %9 = arith.cmpi eq, %arg2, %c0_i32_8 : i32
    %10 = arith.extui %9 : i1 to i32
    %c0_i32_9 = arith.constant 0 : i32
    %11 = arith.cmpi ne, %10, %c0_i32_9 : i32
    scf.if %11 {
      %c0_10 = arith.constant 0 : index
      %c0_11 = arith.constant 0 : index
      %12 = vector.load %arg7[%c0_10, %c0_11] : memref<128x128xf32, #tpu.memory_space<vmem>>, vector<128x128xf32>
      %c0_12 = arith.constant 0 : index
      %c0_13 = arith.constant 0 : index
      %13 = vector.load %arg5[%c0_12, %c0_13] : memref<1x128xf32, #tpu.memory_space<vmem>>, vector<1x128xf32>
      %14 = vector.broadcast %13 : vector<1x128xf32> to vector<128x128xf32>
      %15 = arith.addf %12, %14 : vector<128x128xf32>
      %16 = arith.truncf %15 : vector<128x128xf32> to vector<128x128xbf16>
      %c0_14 = arith.constant 0 : index
      %c0_15 = arith.constant 0 : index
      %17 = vector.load %arg6[%c0_14, %c0_15] : memref<128x128xbf16, #tpu.memory_space<vmem>>, vector<128x128xbf16>
      tpu.vector_store %arg6[%c0_14, %c0_15], %16 {strides = array<i32>} : memref<128x128xbf16, #tpu.memory_space<vmem>>, vector<128x128xbf16>,
    } else {
    }
    return
  }
  func.func @transform_0(%arg0: i32, %arg1: i32, %arg2: i32) -> (i32, i32) {
    %c0_i32 = arith.constant 0 : i32
    return %arg0, %arg2 : i32, i32
  }
  func.func @transform_1(%arg0: i32, %arg1: i32, %arg2: i32) -> (i32, i32) {
    %c0_i32 = arith.constant 0 : i32
    return %arg2, %arg1 : i32, i32
  }
  func.func @transform_2(%arg0: i32, %arg1: i32, %arg2: i32) -> (i32, i32) {
    %c0_i32 = arith.constant 0 : i32
    %c0_i32_0 = arith.constant 0 : i32
    return %c0_i32, %arg1 : i32, i32
  }
  func.func @transform_3(%arg0: i32, %arg1: i32, %arg2: i32) -> (i32, i32) {
    %c0_i32 = arith.constant 0 : i32
    return %arg0, %arg1 : i32, i32
  }
}

module attributes {stable_mosaic.version = 11 : i64} {
  func.func @_matmul_bias_res_relu_kernel(%arg0: i32, %arg1: i32, %arg2: i32, %arg3: memref<128x72xbf16, #tpu.memory_space<vmem>>, %arg4: memref<72x128xbf16, #tpu.memory_space<vmem>>, %arg5: memref<1x128xf32, #tpu.memory_space<vmem>>, %arg6: memref<128x128xbf16, #tpu.memory_space<vmem>>, %arg7: memref<128x128xf32, #tpu.memory_space<vmem>>, %arg8: memref<128x128xf32, #tpu.memory_space<vmem>>) attributes {dimension_semantics = [#tpu.dimension_semantics<parallel>, #tpu.dimension_semantics<parallel>, #tpu.dimension_semantics<arbitrary>], iteration_bounds = array<i64: 1, 1, 1>, scalar_prefetch = 0 : i64, scratch_operands = 1 : i64, tpu.core_type = #tpu.core_type<tc>, window_params = [{transform_indices = @transform_0, window_bounds = array<i64: 128, 72>}, {transform_indices = @transform_1, window_bounds = array<i64: 72, 128>}, {transform_indices = @transform_2, window_bounds = array<i64: 1, 128>}, {transform_indices = @transform_3, window_bounds = array<i64: 128, 128>}, {transform_indices = @transform_4, window_bounds = array<i64: 128, 128>}]} {
    %c0_i32 = arith.constant 0 : i32
    %0 = arith.cmpi eq, %arg2, %c0_i32 : i32
    %1 = arith.extui %0 : i1 to i32
    %c0_i32_0 = arith.constant 0 : i32
    %2 = arith.cmpi ne, %1, %c0_i32_0 : i32
    scf.if %2 {
      %cst_10 = arith.constant 0.000000e+00 : f32
      %12 = vector.broadcast %cst_10 : f32 to vector<128x128xf32>
      %c0_11 = arith.constant 0 : index
      %c0_12 = arith.constant 0 : index
      %13 = vector.load %arg8[%c0_11, %c0_12] : memref<128x128xf32, #tpu.memory_space<vmem>>, vector<128x128xf32>
      tpu.vector_store %arg8[%c0_11, %c0_12], %12 {strides = array<i32>} : memref<128x128xf32, #tpu.memory_space<vmem>>, vector<128x128xf32>,
    } else {
    }
    %c0 = arith.constant 0 : index
    %c0_1 = arith.constant 0 : index
    %3 = vector.load %arg8[%c0, %c0_1] : memref<128x128xf32, #tpu.memory_space<vmem>>, vector<128x128xf32>
    %c0_2 = arith.constant 0 : index
    %c0_3 = arith.constant 0 : index
    %4 = vector.load %arg3[%c0_2, %c0_3] : memref<128x72xbf16, #tpu.memory_space<vmem>>, vector<128x72xbf16>
    %c0_4 = arith.constant 0 : index
    %c0_5 = arith.constant 0 : index
    %5 = vector.load %arg4[%c0_4, %c0_5] : memref<72x128xbf16, #tpu.memory_space<vmem>>, vector<72x128xbf16>
    %cst = arith.constant dense<0.000000e+00> : vector<128x128xf32>
    %6 = tpu.matmul %4, %5, %cst {dimension_numbers = #tpu.dot_dimension_numbers<[1], [0], [0], [1], [0, 0, 1, 1], [], []>} : vector<128x72xbf16>, vector<72x128xbf16>, vector<128x128xf32> -> vector<128x128xf32>
    %7 = arith.addf %3, %6 : vector<128x128xf32>
    %c0_6 = arith.constant 0 : index
    %c0_7 = arith.constant 0 : index
    %8 = vector.load %arg8[%c0_6, %c0_7] : memref<128x128xf32, #tpu.memory_space<vmem>>, vector<128x128xf32>
    tpu.vector_store %arg8[%c0_6, %c0_7], %7 {strides = array<i32>} : memref<128x128xf32, #tpu.memory_space<vmem>>, vector<128x128xf32>,
    %c0_i32_8 = arith.constant 0 : i32
    %9 = arith.cmpi eq, %arg2, %c0_i32_8 : i32
    %10 = arith.extui %9 : i1 to i32
    %c0_i32_9 = arith.constant 0 : i32
    %11 = arith.cmpi ne, %10, %c0_i32_9 : i32
    scf.if %11 {
      %c0_10 = arith.constant 0 : index
      %c0_11 = arith.constant 0 : index
      %12 = vector.load %arg8[%c0_10, %c0_11] : memref<128x128xf32, #tpu.memory_space<vmem>>, vector<128x128xf32>
      %c0_12 = arith.constant 0 : index
      %c0_13 = arith.constant 0 : index
      %13 = vector.load %arg5[%c0_12, %c0_13] : memref<1x128xf32, #tpu.memory_space<vmem>>, vector<1x128xf32>
      %14 = vector.broadcast %13 : vector<1x128xf32> to vector<128x128xf32>
      %15 = arith.addf %12, %14 : vector<128x128xf32>
      %c0_14 = arith.constant 0 : index
      %c0_15 = arith.constant 0 : index
      %16 = vector.load %arg6[%c0_14, %c0_15] : memref<128x128xbf16, #tpu.memory_space<vmem>>, vector<128x128xbf16>
      %17 = arith.extf %16 : vector<128x128xbf16> to vector<128x128xf32>
      %18 = arith.addf %15, %17 : vector<128x128xf32>
      %cst_16 = arith.constant 0.000000e+00 : f32
      %19 = vector.broadcast %cst_16 : f32 to vector<128x128xf32>
      %20 = arith.maximumf %18, %19 : vector<128x128xf32>
      %c0_17 = arith.constant 0 : index
      %c0_18 = arith.constant 0 : index
      %21 = vector.load %arg7[%c0_17, %c0_18] : memref<128x128xf32, #tpu.memory_space<vmem>>, vector<128x128xf32>
      tpu.vector_store %arg7[%c0_17, %c0_18], %20 {strides = array<i32>} : memref<128x128xf32, #tpu.memory_space<vmem>>, vector<128x128xf32>,
    } else {
    }
    return
  }
  func.func @transform_0(%arg0: i32, %arg1: i32, %arg2: i32) -> (i32, i32) {
    %c0_i32 = arith.constant 0 : i32
    return %arg0, %arg2 : i32, i32
  }
  func.func @transform_1(%arg0: i32, %arg1: i32, %arg2: i32) -> (i32, i32) {
    %c0_i32 = arith.constant 0 : i32
    return %arg2, %arg1 : i32, i32
  }
  func.func @transform_2(%arg0: i32, %arg1: i32, %arg2: i32) -> (i32, i32) {
    %c0_i32 = arith.constant 0 : i32
    %c0_i32_0 = arith.constant 0 : i32
    return %c0_i32, %arg1 : i32, i32
  }
  func.func @transform_3(%arg0: i32, %arg1: i32, %arg2: i32) -> (i32, i32) {
    %c0_i32 = arith.constant 0 : i32
    return %arg0, %arg1 : i32, i32
  }
  func.func @transform_4(%arg0: i32, %arg1: i32, %arg2: i32) -> (i32, i32) {
    %c0_i32 = arith.constant 0 : i32
    return %arg0, %arg1 : i32, i32
  }
}

</mosaic_0001>

<bundles_post_ra>
// kernel: basic_block_forward.3
= control target key start
LH: loop header
LB: loop body
LE: loop exit
PB: predicated region body
PF: predicated region fallthrough
CT: control target
= control target key end

     0   :  { %vm127_vm0 = vcmask 293888   ;;  %vm152_vm1 = vcmask 1041408   ;;  %s666_s1 = inlined_call_operand.vmem [shape: bf16[36,128], index: 1, kind: input, shape index: {}]   ;;  %s667_s0 = inlined_call_operand.vmem [shape: bf16[128,36], index: 0, kind: input, shape index: {}]   ;;  %s668_s2 = inlined_call_operand.vmem [shape: f32[1,128], index: 2, kind: input, shape index: {}]   ;;  %s669_s3 = inlined_call_operand.vmem [shape: bf16[128,128], index: 3, kind: output, shape index: {}]  }
   0x1   :  { %v567_v0 = vld [vmem:[%s666_s1] sm:$0xff]   ;;  %v568_v1 = vld [vmem:[%s666_s1 + $0x8] sm:$0xff]   ;;  %v569_v2 = vld [vmem:[%s666_s1 + $0x10] ss:$0 sps:$4 sm:$0x33]  }
   0x2   :  { %537 = vmatprep.subr.bf16.mxu0 %v567_v0  ;;  %559 = vmatprep.subr.bf16.mxu1 %v567_v0  ;;  %v570_v3 = vld [vmem:[%s667_s0] sm:$0xff]   ;;  %v154_v5 = vsel %vm152_vm1, %v569_v2, 0  ;;  %v572_v6 = vld [vmem:[%s667_s0 + $0x8] sm:$0xff]   ;;  %v574_v8 = vld [vmem:[%s667_s0 + $0x10] sm:$0xff]  }
   0x3   :  { %538 = vmatpush3.bf16.msra.mxu0 %v567_v0  ;;  %562 = vmatpush3.bf16.msra.mxu1 %v567_v0  ;;  %v571_v4 = vld [vmem:[%s667_s0 + $0x20] sm:$0xff]   ;;  %v573_v7 = vld [vmem:[%s667_s0 + $0x28] sm:$0xff]   ;;  %v575_v9 = vld [vmem:[%s667_s0 + $0x30] sm:$0xff]  }
   0x4   :  { %539 = vmatprep.subr.bf16.mxu0 %v568_v1  ;;  %560 = vmatprep.subr.bf16.mxu1 %v568_v1  ;;  %v576_v10 = vld [vmem:[%s667_s0 + $0x18] sm:$0xff]   ;;  %v446_v12 = vld [vmem:[%s668_s2] ss:$0 sm:$0xff] }
   0x5   :  { %543 = vmatprep.mubr.msk.bf16.mxu0 %vm127_vm0, %v570_v3  ;;  %551 = vmatprep.mubr.msk.bf16.mxu1 %vm127_vm0, %v571_v4  ;;  %v577_v11 = vld [vmem:[%s667_s0 + $0x38] sm:$0xff]  }
   0x7   :  { %540 = vmatpush3.bf16.msra.mxu0 %v568_v1  ;;  %563 = vmatpush3.bf16.msra.mxu1 %v568_v1 }
   0x8   :  { %565 = vmatprep.subr.msk.bf16.mxu0 %vm152_vm1, %v569_v2  ;;  %566 = vmatprep.subr.msk.bf16.mxu1 %vm152_vm1, %v569_v2 }
   0xb   :  { %542 = vmatpush3.bf16.msra.mxu0 %v154_v5  ;;  %564 = vmatpush3.bf16.msra.mxu1 %v154_v5 }
   0xe   :  { %544 = vmatmul.mubr.msk.bf16.vlgmr.msra.gmra.mrb[0].mxu0 %vm127_vm0, %v572_v6  ;;  %552 = vmatmul.mubr.msk.bf16.vlgmr.msra.gmra.mrb[0].mxu1 %vm127_vm0, %v573_v7 }
   0xf   :  { %547 = vmatprep.mubr.msk.bf16.mxu0 %vm127_vm0, %v574_v8  ;;  %555 = vmatprep.mubr.msk.bf16.mxu1 %vm127_vm0, %v575_v9 }
  0x16   :  { %548 = vmatmul.mubr.msk.bf16.gmra.mrb[4].mxu0 %vm127_vm0, %v576_v10  ;;  %556 = vmatmul.mubr.msk.bf16.gmra.mrb[4].mxu1 %vm127_vm0, %v577_v11 }
  0xe1   :  { %v545_v13 = vpop.f32.mrb[0].mxu0  ;;  %v553_v14 = vpop.f32.mrb[0].mxu1 }
  0xe2   :  { %v313_v15 = vadd.f32 %v545_v13, %v446_v12  ;;  %v321_v16 = vadd.f32 %v553_v14, %v446_v12  ;;  %v190_v17 = vpop.f32.mrb[1].mxu0  ;;  %v222_v18 = vpop.f32.mrb[1].mxu1 }
  0xe3   :  { %v311_v19 = vadd.f32 %v446_v12, %v190_v17  ;;  %v319_v20 = vadd.f32 %v446_v12, %v222_v18  ;;  %v546_v21 = vpop.f32.mrb[2].mxu0  ;;  %v554_v22 = vpop.f32.mrb[2].mxu1 }
  0xe4   :  { %v314_v23 = vadd.f32 %v546_v21, %v446_v12  ;;  %v322_v24 = vadd.f32 %v554_v22, %v446_v12  ;;  %v193_v25 = vpop.f32.mrb[3].mxu0  ;;  %v225_v26 = vpop.f32.mrb[3].mxu1  ;;  %v329_v29 = vmax.f32 %v313_v15, 0.0  ;;  %v337_v30 = vmax.f32 %v321_v16, 0.0 }
  0xe5   :  { %v312_v27 = vadd.f32 %v446_v12, %v193_v25  ;;  %v320_v28 = vadd.f32 %v446_v12, %v225_v26  ;;  %v327_v33 = vmax.f32 %v311_v19, 0.0  ;;  %v335_v34 = vmax.f32 %v319_v20, 0.0 }
  0xe6   :  { %v330_v31 = vmax.f32 %v314_v23, 0.0  ;;  %v338_v32 = vmax.f32 %v322_v24, 0.0 }
  0xe7   :  { %v328_v35 = vmax.f32 %v312_v27, 0.0  ;;  %v336_v36 = vmax.f32 %v320_v28, 0.0 }
  0xe8   :  { %v487_v37 = vpack.c.bf16 %v330_v31, %v329_v29  ;;  %v507_v38 = vpack.c.bf16 %v338_v32, %v337_v30 }
  0xe9   :  { %v482_v39 = vpack.c.bf16 %v328_v35, %v327_v33  ;;  %v502_v40 = vpack.c.bf16 %v336_v36, %v335_v34  ;;  %v549_v41 = vpop.f32.mrb[4].mxu0  ;;  %v557_v42 = vpop.f32.mrb[4].mxu1 }
  0xea   :  { %519 = vst [vmem:[%s669_s3 + $0x8] sm:$0xff] %v487_v37   ;;  %523 = vst [vmem:[%s669_s3 + $0x28] sm:$0xff] %v507_v38   ;;  %v317_v43 = vadd.f32 %v549_v41, %v446_v12  ;;  %v325_v44 = vadd.f32 %v557_v42, %v446_v12  ;;  %v206_v45 = vpop.f32.mrb[5].mxu0  ;;  %v238_v46 = vpop.f32.mrb[5].mxu1 }
  0xeb   :  { %483 = vst [vmem:[%s669_s3] sm:$0xff] %v482_v39   ;;  %522 = vst [vmem:[%s669_s3 + $0x20] sm:$0xff] %v502_v40   ;;  %v315_v47 = vadd.f32 %v446_v12, %v206_v45  ;;  %v323_v48 = vadd.f32 %v446_v12, %v238_v46  ;;  %v550_v49 = vpop.f32.mrb[6].mxu0  ;;  %v558_v50 = vpop.f32.mrb[6].mxu1 }
  0xec   :  { %v318_v51 = vadd.f32 %v550_v49, %v446_v12  ;;  %v326_v52 = vadd.f32 %v558_v50, %v446_v12  ;;  %v209_v53 = vpop.f32.mrb[7].mxu0  ;;  %v241_v54 = vpop.f32.mrb[7].mxu1  ;;  %v333_v57 = vmax.f32 %v317_v43, 0.0  ;;  %v341_v58 = vmax.f32 %v325_v44, 0.0 }
  0xed   :  { %v316_v55 = vadd.f32 %v446_v12, %v209_v53  ;;  %v324_v56 = vadd.f32 %v446_v12, %v241_v54  ;;  %v331_v61 = vmax.f32 %v315_v47, 0.0  ;;  %v339_v62 = vmax.f32 %v323_v48, 0.0 }
  0xee   :  { %v334_v59 = vmax.f32 %v318_v51, 0.0  ;;  %v342_v60 = vmax.f32 %v326_v52, 0.0 }
  0xef   :  { %v332_v63 = vmax.f32 %v316_v55, 0.0  ;;  %v340_v0 = vmax.f32 %v324_v56, 0.0 }
  0xf0   :  { %v497_v1 = vpack.c.bf16 %v334_v59, %v333_v57  ;;  %v517_v2 = vpack.c.bf16 %v342_v60, %v341_v58 }
  0xf1   :  { %v492_v3 = vpack.c.bf16 %v332_v63, %v331_v61  ;;  %v512_v4 = vpack.c.bf16 %v340_v0, %v339_v62 }
  0xf2   :  { %521 = vst [vmem:[%s669_s3 + $0x18] sm:$0xff] %v497_v1   ;;  %525 = vst [vmem:[%s669_s3 + $0x38] sm:$0xff] %v517_v2  }
  0xf3   :  { %520 = vst [vmem:[%s669_s3 + $0x10] sm:$0xff] %v492_v3   ;;  %524 = vst [vmem:[%s669_s3 + $0x30] sm:$0xff] %v512_v4  }

// kernel: basic_block_forward.4
= control target key start
LH: loop header
LB: loop body
LE: loop exit
PB: predicated region body
PF: predicated region fallthrough
CT: control target
= control target key end

     0   :  { %vm133_vm0 = vcmask 1041408   ;;  %vm108_vm1 = vcmask 31744   ;;  %s609_s1 = inlined_call_operand.vmem [shape: bf16[4,128], index: 1, kind: input, shape index: {}]   ;;  %s610_s0 = inlined_call_operand.vmem [shape: bf16[128,4], index: 0, kind: input, shape index: {}]   ;;  %s611_s2 = inlined_call_operand.vmem [shape: f32[1,128], index: 2, kind: input, shape index: {}]   ;;  %s612_s3 = inlined_call_operand.vmem [shape: bf16[128,128], index: 3, kind: output, shape index: {}]  }
   0x1   :  { %v67_v0 = vld [vmem:[%s609_s1] sm:$0x3]  ;;  %v521_v4 = vld [vmem:[%s610_s0 + $0x8] sm:$0xff]   ;;  %v523_v6 = vld [vmem:[%s610_s0 + $0x10] sm:$0xff]  }
   0x2   :  { %517 = vmatprep.subr.msk.bf16.mxu0 %vm133_vm0, %v67_v0  ;;  %518 = vmatprep.subr.msk.bf16.mxu1 %vm133_vm0, %v67_v0  ;;  %v135_v1 = vsel %vm133_vm0, %v67_v0, 0  ;;  %v519_v2 = vld [vmem:[%s610_s0] sm:$0xff]   ;;  %v522_v5 = vld [vmem:[%s610_s0 + $0x28] sm:$0xff]   ;;  %v524_v7 = vld [vmem:[%s610_s0 + $0x30] sm:$0xff]  }
   0x3   :  { %498 = vmatpush3.bf16.msra.mxu0 %v135_v1  ;;  %516 = vmatpush3.bf16.msra.mxu1 %v135_v1  ;;  %v520_v3 = vld [vmem:[%s610_s0 + $0x20] sm:$0xff]   ;;  %v525_v8 = vld [vmem:[%s610_s0 + $0x18] sm:$0xff]  }
   0x4   :  { %499 = vmatprep.mubr.msk.bf16.mxu0 %vm108_vm1, %v519_v2  ;;  %507 = vmatprep.mubr.msk.bf16.mxu1 %vm108_vm1, %v520_v3  ;;  %v526_v9 = vld [vmem:[%s610_s0 + $0x38] sm:$0xff]   ;;  %v408_v11 = vld [vmem:[%s611_s2] ss:$0 sm:$0xff] }
   0x6   :  { %500 = vmatmul.mubr.msk.bf16.vlgmr.msra.gmra.mrb[0].mxu0 %vm108_vm1, %v521_v4  ;;  %508 = vmatmul.mubr.msk.bf16.vlgmr.msra.gmra.mrb[0].mxu1 %vm108_vm1, %v522_v5 }
   0x7   :  { %503 = vmatprep.mubr.msk.bf16.mxu0 %vm108_vm1, %v523_v6  ;;  %511 = vmatprep.mubr.msk.bf16.mxu1 %vm108_vm1, %v524_v7 }
   0xe   :  { %504 = vmatmul.mubr.msk.bf16.gmra.mrb[4].mxu0 %vm108_vm1, %v525_v8  ;;  %512 = vmatmul.mubr.msk.bf16.gmra.mrb[4].mxu1 %vm108_vm1, %v526_v9 }
  0xd9   :  { %v501_v10 = vpop.f32.mrb[0].mxu0  ;;  %v509_v12 = vpop.f32.mrb[0].mxu1 }
  0xda   :  { %v171_v13 = vpop.f32.mrb[1].mxu0  ;;  %v203_v14 = vpop.f32.mrb[1].mxu1  ;;  %v294_v16 = vadd.f32 %v501_v10, %v408_v11  ;;  %v302_v20 = vadd.f32 %v509_v12, %v408_v11 }
  0xdb   :  { %v502_v15 = vpop.f32.mrb[2].mxu0  ;;  %v510_v18 = vpop.f32.mrb[2].mxu1  ;;  %v292_v21 = vadd.f32 %v408_v11, %v171_v13  ;;  %v300_v25 = vadd.f32 %v408_v11, %v203_v14 }
  0xdc   :  { %v295_v17 = vadd.f32 %v502_v15, %v408_v11  ;;  %v174_v19 = vpop.f32.mrb[3].mxu0  ;;  %v303_v22 = vadd.f32 %v510_v18, %v408_v11  ;;  %v206_v24 = vpop.f32.mrb[3].mxu1 }
  0xdd   :  { %v293_v23 = vadd.f32 %v408_v11, %v174_v19  ;;  %v301_v27 = vadd.f32 %v408_v11, %v206_v24 }
  0xde   :  { %v449_v26 = vpack.c.bf16 %v295_v17, %v294_v16  ;;  %v469_v28 = vpack.c.bf16 %v303_v22, %v302_v20 }
  0xdf   :  { %v444_v29 = vpack.c.bf16 %v293_v23, %v292_v21  ;;  %v464_v30 = vpack.c.bf16 %v301_v27, %v300_v25 }
  0xe0   :  { %481 = vst [vmem:[%s612_s3 + $0x8] sm:$0xff] %v449_v26   ;;  %485 = vst [vmem:[%s612_s3 + $0x28] sm:$0xff] %v469_v28  }
  0xe1   :  { %445 = vst [vmem:[%s612_s3] sm:$0xff] %v444_v29   ;;  %v505_v31 = vpop.f32.mrb[4].mxu0  ;;  %484 = vst [vmem:[%s612_s3 + $0x20] sm:$0xff] %v464_v30   ;;  %v513_v32 = vpop.f32.mrb[4].mxu1 }
  0xe2   :  { %v187_v33 = vpop.f32.mrb[5].mxu0  ;;  %v219_v34 = vpop.f32.mrb[5].mxu1  ;;  %v298_v36 = vadd.f32 %v505_v31, %v408_v11  ;;  %v306_v40 = vadd.f32 %v513_v32, %v408_v11 }
  0xe3   :  { %v506_v35 = vpop.f32.mrb[6].mxu0  ;;  %v514_v38 = vpop.f32.mrb[6].mxu1  ;;  %v296_v41 = vadd.f32 %v408_v11, %v187_v33  ;;  %v304_v45 = vadd.f32 %v408_v11, %v219_v34 }
  0xe4   :  { %v299_v37 = vadd.f32 %v506_v35, %v408_v11  ;;  %v190_v39 = vpop.f32.mrb[7].mxu0  ;;  %v307_v42 = vadd.f32 %v514_v38, %v408_v11  ;;  %v222_v44 = vpop.f32.mrb[7].mxu1 }
  0xe5   :  { %v297_v43 = vadd.f32 %v408_v11, %v190_v39  ;;  %v305_v47 = vadd.f32 %v408_v11, %v222_v44 }
  0xe6   :  { %v459_v46 = vpack.c.bf16 %v299_v37, %v298_v36  ;;  %v479_v48 = vpack.c.bf16 %v307_v42, %v306_v40 }
  0xe7   :  { %v454_v49 = vpack.c.bf16 %v297_v43, %v296_v41  ;;  %v474_v50 = vpack.c.bf16 %v305_v47, %v304_v45 }
  0xe8   :  { %483 = vst [vmem:[%s612_s3 + $0x18] sm:$0xff] %v459_v46   ;;  %487 = vst [vmem:[%s612_s3 + $0x38] sm:$0xff] %v479_v48  }
  0xe9   :  { %482 = vst [vmem:[%s612_s3 + $0x10] sm:$0xff] %v454_v49   ;;  %486 = vst [vmem:[%s612_s3 + $0x30] sm:$0xff] %v474_v50  }

// kernel: basic_block_forward.5
= control target key start
LH: loop header
LB: loop body
LE: loop exit
PB: predicated region body
PF: predicated region fallthrough
CT: control target
= control target key end

     0   :  { %vm146_vm0 = vcmask 588800   ;;  %vm171_vm1 = vcmask 1043456   ;;  %s720_s1 = inlined_call_operand.vmem [shape: bf16[72,128], index: 1, kind: input, shape index: {}]   ;;  %s721_s0 = inlined_call_operand.vmem [shape: bf16[128,72], index: 0, kind: input, shape index: {}]   ;;  %s722_s3 = inlined_call_operand.vmem [shape: bf16[128,128], index: 3, kind: input, shape index: {}]   ;;  %s723_s2 = inlined_call_operand.vmem [shape: f32[1,128], index: 2, kind: input, shape index: {}]   ;;  %s724_s4 = inlined_call_operand.vmem [shape: f32[128,128], index: 4, kind: output, shape index: {}]  }
   0x1   :  { %v542_v0 = vld [vmem:[%s720_s1] sm:$0xff]   ;;  %v543_v1 = vld [vmem:[%s720_s1 + $0x8] sm:$0xff]   ;;  %v544_v2 = vld [vmem:[%s720_s1 + $0x10] sm:$0xff]  }
   0x2   :  { %504 = vmatprep.subr.bf16.mxu0 %v542_v0  ;;  %530 = vmatprep.subr.bf16.mxu1 %v542_v0  ;;  %v547_v3 = vld [vmem:[%s721_s0] sm:$0xff]   ;;  %v545_v5 = vld [vmem:[%s720_s1 + $0x18] sm:$0xff]   ;;  %v549_v8 = vld [vmem:[%s721_s0 + $0x8] sm:$0xff]  }
   0x3   :  { %505 = vmatpush3.bf16.msra.mxu0 %v542_v0  ;;  %535 = vmatpush3.bf16.msra.mxu1 %v542_v0  ;;  %v548_v4 = vld [vmem:[%s721_s0 + $0x20] sm:$0xff]   ;;  %v550_v9 = vld [vmem:[%s721_s0 + $0x28] sm:$0xff]   ;;  %v551_v10 = vld [vmem:[%s721_s0 + $0x10] sm:$0xff]  }
   0x4   :  { %506 = vmatprep.subr.bf16.mxu0 %v543_v1  ;;  %531 = vmatprep.subr.bf16.mxu1 %v543_v1  ;;  %v546_v6 = vld [vmem:[%s720_s1 + $0x20] ss:$0 sps:$4 sm:$0xff]   ;;  %v552_v11 = vld [vmem:[%s721_s0 + $0x30] sm:$0xff]   ;;  %v553_v12 = vld [vmem:[%s721_s0 + $0x18] sm:$0xff]  }
   0x5   :  { %514 = vmatprep.mubr.msk.bf16.mxu0 %vm146_vm0, %v547_v3  ;;  %522 = vmatprep.mubr.msk.bf16.mxu1 %vm146_vm0, %v548_v4  ;;  %v173_v7 = vsel %vm171_vm1, %v546_v6, 0  ;;  %v554_v13 = vld [vmem:[%s721_s0 + $0x38] sm:$0xff]   ;;  %v484_v14 = vld [vmem:[%s722_s3 + $0x8] sm:$0xff]   ;;  %v453_v16 = vld [vmem:[%s722_s3] sm:$0xff]  }
   0x6   :  { %v488_v15 = vld [vmem:[%s722_s3 + $0x28] sm:$0xff]   ;;  %v487_v17 = vld [vmem:[%s722_s3 + $0x20] sm:$0xff]   ;;  %v458_v19 = vunpack.c.l.bf16 %v484_v14  ;;  %v454_v23 = vunpack.c.l.bf16 %v453_v16  ;;  %v459_v29 = vunpack.c.h.bf16 %v484_v14  ;;  %v455_v35 = vunpack.c.h.bf16 %v453_v16  ;;  %v486_v47 = vld [vmem:[%s722_s3 + $0x18] sm:$0xff]  }
   0x7   :  { %507 = vmatpush3.bf16.msra.mxu0 %v543_v1  ;;  %536 = vmatpush3.bf16.msra.mxu1 %v543_v1  ;;  %v642_v18 = vld [vmem:[%s723_s2] ss:$0 sm:$0xff]  ;;  %v474_v20 = vunpack.c.l.bf16 %v488_v15  ;;  %v470_v24 = vunpack.c.l.bf16 %v487_v17  ;;  %v475_v30 = vunpack.c.h.bf16 %v488_v15  ;;  %v471_v36 = vunpack.c.h.bf16 %v487_v17  ;;  %v490_v48 = vld [vmem:[%s722_s3 + $0x38] sm:$0xff]   ;;  %v485_v53 = vld [vmem:[%s722_s3 + $0x10] sm:$0xff]  }
   0x8   :  { %508 = vmatprep.subr.bf16.mxu0 %v544_v2  ;;  %532 = vmatprep.subr.bf16.mxu1 %v544_v2  ;;  %v489_v54 = vld [vmem:[%s722_s3 + $0x30] sm:$0xff]   ;;  %v466_v61 = vunpack.c.l.bf16 %v486_v47  ;;  %v482_v62 = vunpack.c.l.bf16 %v490_v48  ;;  %v462_v3 = vunpack.c.l.bf16 %v485_v53  ;;  %v463_v15 = vunpack.c.h.bf16 %v485_v53 }
   0x9   :  { %v478_v4 = vunpack.c.l.bf16 %v489_v54  ;;  %v479_v16 = vunpack.c.h.bf16 %v489_v54 }
   0xb   :  { %509 = vmatpush3.bf16.msra.mxu0 %v544_v2  ;;  %537 = vmatpush3.bf16.msra.mxu1 %v544_v2 }
   0xc   :  { %510 = vmatprep.subr.bf16.mxu0 %v545_v5  ;;  %533 = vmatprep.subr.bf16.mxu1 %v545_v5 }
   0xf   :  { %511 = vmatpush3.bf16.msra.mxu0 %v545_v5  ;;  %538 = vmatpush3.bf16.msra.mxu1 %v545_v5 }
  0x10   :  { %540 = vmatprep.subr.msk.bf16.mxu0 %vm171_vm1, %v546_v6  ;;  %541 = vmatprep.subr.msk.bf16.mxu1 %vm171_vm1, %v546_v6 }
  0x13   :  { %513 = vmatpush3.bf16.msra.mxu0 %v173_v7  ;;  %539 = vmatpush3.bf16.msra.mxu1 %v173_v7 }
  0x16   :  { %515 = vmatmul.mubr.msk.bf16.vlgmr.msra.gmra.mrb[0].mxu0 %vm146_vm0, %v549_v8  ;;  %523 = vmatmul.mubr.msk.bf16.vlgmr.msra.gmra.mrb[0].mxu1 %vm146_vm0, %v550_v9  ;;  %v467_v9 = vunpack.c.h.bf16 %v486_v47 }
  0x17   :  { %518 = vmatprep.mubr.msk.bf16.mxu0 %vm146_vm0, %v551_v10  ;;  %526 = vmatprep.mubr.msk.bf16.mxu1 %vm146_vm0, %v552_v11  ;;  %v483_v10 = vunpack.c.h.bf16 %v490_v48 }
  0x1e   :  { %519 = vmatmul.mubr.msk.bf16.gmra.mrb[4].mxu0 %vm146_vm0, %v553_v12  ;;  %527 = vmatmul.mubr.msk.bf16.gmra.mrb[4].mxu1 %vm146_vm0, %v554_v13 }
  0xe9   :  { %v516_v21 = vpop.f32.mrb[0].mxu0  ;;  %v524_v22 = vpop.f32.mrb[0].mxu1 }
  0xea   :  { %v332_v25 = vadd.f32 %v516_v21, %v642_v18  ;;  %v340_v26 = vadd.f32 %v524_v22, %v642_v18  ;;  %v209_v27 = vpop.f32.mrb[1].mxu0  ;;  %v241_v28 = vpop.f32.mrb[1].mxu1 }
  0xeb   :  { %v330_v31 = vadd.f32 %v642_v18, %v209_v27  ;;  %v338_v32 = vadd.f32 %v642_v18, %v241_v28  ;;  %v517_v33 = vpop.f32.mrb[2].mxu0  ;;  %v525_v34 = vpop.f32.mrb[2].mxu1 }
  0xec   :  { %v380_v37 = vadd.f32 %v458_v19, %v332_v25  ;;  %v388_v38 = vadd.f32 %v474_v20, %v340_v26  ;;  %v333_v39 = vadd.f32 %v517_v33, %v642_v18  ;;  %v341_v40 = vadd.f32 %v525_v34, %v642_v18  ;;  %v212_v41 = vpop.f32.mrb[3].mxu0  ;;  %v244_v42 = vpop.f32.mrb[3].mxu1 }
  0xed   :  { %v378_v43 = vadd.f32 %v454_v23, %v330_v31  ;;  %v386_v44 = vadd.f32 %v470_v24, %v338_v32  ;;  %v331_v45 = vadd.f32 %v642_v18, %v212_v41  ;;  %v339_v46 = vadd.f32 %v642_v18, %v244_v42 }
  0xee   :  { %v396_v49 = vmax.f32 %v380_v37, 0.0  ;;  %v404_v50 = vmax.f32 %v388_v38, 0.0  ;;  %v381_v51 = vadd.f32 %v459_v29, %v333_v39  ;;  %v389_v52 = vadd.f32 %v475_v30, %v341_v40 }
  0xef   :  { %v394_v55 = vmax.f32 %v378_v43, 0.0  ;;  %v402_v56 = vmax.f32 %v386_v44, 0.0  ;;  %v379_v57 = vadd.f32 %v455_v35, %v331_v45  ;;  %v387_v58 = vadd.f32 %v471_v36, %v339_v46 }
  0xf0   :  { %412 = vst [vmem:[%s724_s4 + $0x10] sm:$0xff] %v396_v49  ;;  %420 = vst [vmem:[%s724_s4 + $0x50] sm:$0xff] %v404_v50  ;;  %v397_v59 = vmax.f32 %v381_v51, 0.0  ;;  %v405_v60 = vmax.f32 %v389_v52, 0.0 }
  0xf1   :  { %410 = vst [vmem:[%s724_s4] sm:$0xff] %v394_v55  ;;  %418 = vst [vmem:[%s724_s4 + $0x40] sm:$0xff] %v402_v56  ;;  %v395_v63 = vmax.f32 %v379_v57, 0.0  ;;  %v403_v0 = vmax.f32 %v387_v58, 0.0  ;;  %v520_v1 = vpop.f32.mrb[4].mxu0  ;;  %v528_v2 = vpop.f32.mrb[4].mxu1 }
  0xf2   :  { %413 = vst [vmem:[%s724_s4 + $0x18] sm:$0xff] %v397_v59  ;;  %421 = vst [vmem:[%s724_s4 + $0x58] sm:$0xff] %v405_v60  ;;  %v336_v5 = vadd.f32 %v520_v1, %v642_v18  ;;  %v344_v6 = vadd.f32 %v528_v2, %v642_v18  ;;  %v225_v7 = vpop.f32.mrb[5].mxu0  ;;  %v257_v8 = vpop.f32.mrb[5].mxu1 }
  0xf3   :  { %411 = vst [vmem:[%s724_s4 + $0x8] sm:$0xff] %v395_v63  ;;  %419 = vst [vmem:[%s724_s4 + $0x48] sm:$0xff] %v403_v0  ;;  %v334_v11 = vadd.f32 %v642_v18, %v225_v7  ;;  %v342_v12 = vadd.f32 %v642_v18, %v257_v8  ;;  %v521_v13 = vpop.f32.mrb[6].mxu0  ;;  %v529_v14 = vpop.f32.mrb[6].mxu1 }
  0xf4   :  { %v384_v17 = vadd.f32 %v466_v61, %v336_v5  ;;  %v392_v19 = vadd.f32 %v482_v62, %v344_v6  ;;  %v337_v20 = vadd.f32 %v521_v13, %v642_v18  ;;  %v345_v21 = vadd.f32 %v529_v14, %v642_v18  ;;  %v228_v22 = vpop.f32.mrb[7].mxu0  ;;  %v260_v23 = vpop.f32.mrb[7].mxu1 }
  0xf5   :  { %v382_v24 = vadd.f32 %v462_v3, %v334_v11  ;;  %v390_v25 = vadd.f32 %v478_v4, %v342_v12  ;;  %v335_v26 = vadd.f32 %v642_v18, %v228_v22  ;;  %v343_v27 = vadd.f32 %v642_v18, %v260_v23 }
  0xf6   :  { %v400_v28 = vmax.f32 %v384_v17, 0.0  ;;  %v408_v29 = vmax.f32 %v392_v19, 0.0  ;;  %v385_v30 = vadd.f32 %v467_v9, %v337_v20  ;;  %v393_v31 = vadd.f32 %v483_v10, %v345_v21 }
  0xf7   :  { %v398_v32 = vmax.f32 %v382_v24, 0.0  ;;  %v406_v33 = vmax.f32 %v390_v25, 0.0  ;;  %v383_v34 = vadd.f32 %v463_v15, %v335_v26  ;;  %v391_v35 = vadd.f32 %v479_v16, %v343_v27 }
  0xf8   :  { %416 = vst [vmem:[%s724_s4 + $0x30] sm:$0xff] %v400_v28  ;;  %424 = vst [vmem:[%s724_s4 + $0x70] sm:$0xff] %v408_v29  ;;  %v401_v36 = vmax.f32 %v385_v30, 0.0  ;;  %v409_v37 = vmax.f32 %v393_v31, 0.0 }
  0xf9   :  { %414 = vst [vmem:[%s724_s4 + $0x20] sm:$0xff] %v398_v32  ;;  %422 = vst [vmem:[%s724_s4 + $0x60] sm:$0xff] %v406_v33  ;;  %v399_v18 = vmax.f32 %v383_v34, 0.0  ;;  %v407_v38 = vmax.f32 %v391_v35, 0.0 }
  0xfa   :  { %417 = vst [vmem:[%s724_s4 + $0x38] sm:$0xff] %v401_v36  ;;  %425 = vst [vmem:[%s724_s4 + $0x78] sm:$0xff] %v409_v37 }
  0xfb   :  { %415 = vst [vmem:[%s724_s4 + $0x28] sm:$0xff] %v399_v18  ;;  %423 = vst [vmem:[%s724_s4 + $0x68] sm:$0xff] %v407_v38 }

</bundles_post_ra>
